<compile_context>
chip_gen: v7x
topology: tpu7x:2x2x1
jax: 0.10.0
libtpu: 0.0.40
codegen_flags: <defaults>
</compile_context>

<pallas_src>
import jax
import jax.numpy as jnp
from jax.experimental import pallas as pl
from jax.experimental.pallas import tpu as pltpu


F_PAD = 16      # LSTM input features 11 -> 16 (sublane multiple / clean MXU K dim)
OUT_PAD = 128   # lane-dense head width: out1 (64) and out2 (20) padded to 128 cols


# ----------------------------- Pallas kernel ---------------------------------
def decoder_rnn_kernel(x_ref,      # (S*Bp, Fp)   host-flattened, batch- & feature-padded, seq-major
                       wih_t_ref,  # (Fp, 4H)     LSTM weight_ih_l0, pre-transposed/padded
                       whh_t_ref,  # (H, 4H)      LSTM weight_hh_l0, pre-transposed
                       b_ref,      # (1, 4H)      b_ih + b_hh (pre-summed)
                       w1_t_ref,   # (H, OUT_PAD) out1 weight, pre-transposed, lane-padded
                       b1_ref,     # (1, OUT_PAD) out1 bias, lane-padded
                       w2_t_ref,   # (OUT_PAD, OUT_PAD) out2 weight, pre-transposed, padded
                       b2_ref,     # (1, OUT_PAD) out2 bias, lane-padded
                       out_ref):   # (Bp, OUT_PAD)
    Bp = out_ref.shape[0]              # static, multiple of 8
    S = x_ref.shape[0] // Bp           # static
    H = whh_t_ref.shape[0]

    whh_t = whh_t_ref[...]             # (H, 4H), hoisted out of the loop

    # ---- one-shot input projection + bias (off the serial chain) ------------
    gates_x = (jnp.dot(x_ref[...], wih_t_ref[...],
                       preferred_element_type=jnp.float32)
               + b_ref[...])                                  # (S*Bp, 4H)

    # ---- recurrence: only h @ Whh + pointwise on the critical path ----------
    # S is static -> fully unrolled; each slice below is a constant-offset,
    # sublane-aligned (Bp % 8 == 0) zero-cost view.
    # TODO(synk): hold whh_t in MXU weight registers across the unrolled steps
    # (pltpu.matmul_push_rhs / matmul_acc_lhs / matmul_pop) once that explicit
    # path is validated for (8,32)x(32,128) f32 tiles; jnp.dot kept here for
    # guaranteed lowering.
    h = jnp.zeros((Bp, H), jnp.float32)
    c = jnp.zeros((Bp, H), jnp.float32)
    for t in range(S):
        gates = gates_x[t * Bp:(t + 1) * Bp] + jnp.dot(
            h, whh_t, preferred_element_type=jnp.float32)     # (Bp, 4H)
        sig = jax.nn.sigmoid(gates)    # one full-width EUP push (fine at Bp=8;
        th = jnp.tanh(gates)           # switch to per-gate quarters at TB>=128)
        i = sig[:, 0 * H:1 * H]
        f = sig[:, 1 * H:2 * H]
        o = sig[:, 3 * H:4 * H]
        g = th[:, 2 * H:3 * H]
        c = f * c + i * g
        h = o * jnp.tanh(c)

    # ---- lane-dense output head (unmasked 128-lane store) -------------------
    y1 = jnp.dot(h, w1_t_ref[...],
                 preferred_element_type=jnp.float32) + b1_ref[...]      # (Bp, OUT_PAD)
    out_ref[...] = jnp.dot(y1, w2_t_ref[...],
                           preferred_element_type=jnp.float32) + b2_ref[...]


# ------------------------------ host-side packing -----------------------------
def pack_params(params):
    """One-time host-side prep: (in, out) layout, F padded to F_PAD, lane-dense head."""
    w_ih = jnp.asarray(params["w_ih"], jnp.float32)            # (4H, F)
    four_h, f = w_ih.shape
    hdim = four_h // 4
    wih_t = jnp.zeros((F_PAD, four_h), jnp.float32).at[:f, :].set(w_ih.T)

    w1 = jnp.asarray(params["w1"], jnp.float32)                # (64, H)
    b1 = jnp.asarray(params["b1"], jnp.float32).reshape(1, -1) # (1, 64)
    w2 = jnp.asarray(params["w2"], jnp.float32)                # (O, 64)
    b2 = jnp.asarray(params["b2"], jnp.float32).reshape(1, -1) # (1, O)
    mid, out_dim = w1.shape[0], w2.shape[0]

    w1_t = jnp.zeros((hdim, OUT_PAD), jnp.float32).at[:, :mid].set(w1.T)
    b1_p = jnp.zeros((1, OUT_PAD), jnp.float32).at[:, :mid].set(b1)
    w2_t = jnp.zeros((OUT_PAD, OUT_PAD), jnp.float32).at[:mid, :out_dim].set(w2.T)
    b2_p = jnp.zeros((1, OUT_PAD), jnp.float32).at[:, :out_dim].set(b2)

    return {
        "wih_t": wih_t,                                        # (Fp, 4H)
        "whh_t": jnp.asarray(params["w_hh"], jnp.float32).T,   # (H, 4H)
        "b": jnp.asarray(params["b"], jnp.float32).reshape(1, -1),
        "w1_t": w1_t, "b1": b1_p,
        "w2_t": w2_t, "b2": b2_p,
        "out_dim": out_dim,                                    # python int
    }


# ------------------------------ JAX wrapper -----------------------------------
def decoder_rnn_forward(input_traj, packed):
    """input_traj: (B, S, F) like the PyTorch module's argument. Returns (B, O)."""
    x = jnp.transpose(input_traj, (1, 0, 2)).astype(jnp.float32)   # (S, B, F)
    S, B, F = x.shape
    Bp = max(8, -(-B // 8) * 8)                                    # batch -> sublane multiple
    out_dim = packed["out_dim"]

    # Host-side: batch pad, feature pad, and seq*batch flatten (no in-kernel reshape).
    x_p = jnp.zeros((S, Bp, F_PAD), jnp.float32).at[:, :B, :F].set(x)
    x_flat = x_p.reshape(S * Bp, F_PAD)                            # (S*Bp, Fp)

    vmem = pl.BlockSpec(memory_space=pltpu.MemorySpace.VMEM)
    # Gridless call: total footprint is tens of KB, everything stays VMEM-resident,
    # and at these shapes the call is launch/DMA-latency bound — batch many
    # trajectories into ONE call rather than calling per sequence.
    # TODO(synk): for large B on v7x, use grid=(pl.cdiv(Bp, TB),) with batch
    # BlockSpecs on x/out and dimension_semantics=("parallel",) to engage both
    # TensorCores; TB=256 on v6e/v7x, TB=128 on v5e, with per-gate-quarter
    # activations at those tile sizes.
    out_padded = pl.pallas_call(
        decoder_rnn_kernel,
        out_shape=jax.ShapeDtypeStruct((Bp, OUT_PAD), jnp.float32),
        in_specs=[vmem] * 8,
        out_specs=vmem,
    )(x_flat,
      packed["wih_t"], packed["whh_t"], packed["b"],
      packed["w1_t"], packed["b1"], packed["w2_t"], packed["b2"])
    return out_padded[:B, :out_dim]


# --------------------------- deterministic params ------------------------------
def init_params(key, num_hidden=32, in_feat=11, out_dim=4 * 5):
    ks = jax.random.split(key, 8)
    s = 1.0 / jnp.sqrt(num_hidden)
    u = lambda k, shape, scale: jax.random.uniform(k, shape, jnp.float32, -scale, scale)
    w_ih = u(ks[0], (4 * num_hidden, in_feat), s)
    w_hh = u(ks[1], (4 * num_hidden, num_hidden), s)
    b_ih = u(ks[2], (4 * num_hidden,), s)
    b_hh = u(ks[3], (4 * num_hidden,), s)
    w1 = u(ks[4], (64, num_hidden), 1.0 / jnp.sqrt(num_hidden))
    b1 = u(ks[5], (64,), 1.0 / jnp.sqrt(num_hidden))
    w2 = u(ks[6], (out_dim, 64), 1.0 / jnp.sqrt(64.0))
    b2 = u(ks[7], (out_dim,), 1.0 / jnp.sqrt(64.0))
    return {
        "w_ih": w_ih, "w_hh": w_hh,
        "b": (b_ih + b_hh)[None, :],          # pre-sum LSTM biases, (1, 4H)
        "w1": w1, "b1": b1[None, :],
        "w2": w2, "b2": b2[None, :],
    }


# ----------------------------- pure-JAX reference -------------------------------
def reference_forward(input_traj, params):
    x = jnp.transpose(input_traj, (1, 0, 2)).astype(jnp.float32)
    S, B, _ = x.shape
    H = params["w_hh"].shape[1]
    h = jnp.zeros((B, H), jnp.float32)
    c = jnp.zeros((B, H), jnp.float32)
    for t in range(S):
        gates = x[t] @ params["w_ih"].T + h @ params["w_hh"].T + params["b"]
        i = jax.nn.sigmoid(gates[:, 0 * H:1 * H])
        f = jax.nn.sigmoid(gates[:, 1 * H:2 * H])
        g = jnp.tanh(gates[:, 2 * H:3 * H])
        o = jax.nn.sigmoid(gates[:, 3 * H:4 * H])
        c = f * c + i * g
        h = o * jnp.tanh(c)
    y1 = h @ params["w1"].T + params["b1"]
    return y1 @ params["w2"].T + params["b2"]


if __name__ == "__main__":
    key = jax.random.PRNGKey(0)
    k_p, k_x = jax.random.split(key)

    num_hidden, in_feat, out_dim = 32, 11, 4 * 5   # non-'nuscenes' branch
    batch, seq = 4, 8

    params = init_params(k_p, num_hidden, in_feat, out_dim)
    packed = pack_params(params)                   # host-side transpose/pad, once
    input_traj = jax.random.normal(k_x, (batch, seq, in_feat), jnp.float32)

    out = decoder_rnn_forward(input_traj, packed)
    out = jax.block_until_ready(out)

    ref = reference_forward(input_traj, params)
    assert out.shape == (batch, out_dim)
    assert jnp.allclose(out, ref, atol=1e-4, rtol=1e-4), "mismatch vs reference"

    print("KERNEL_OK")
</pallas_src>

<mosaic_0001>
module attributes {stable_mosaic.version = 11 : i64} {
  func.func @decoder_rnn_kernel(%arg0: memref<64x16xf32, #tpu.memory_space<vmem>>, %arg1: memref<16x128xf32, #tpu.memory_space<vmem>>, %arg2: memref<32x128xf32, #tpu.memory_space<vmem>>, %arg3: memref<1x128xf32, #tpu.memory_space<vmem>>, %arg4: memref<32x128xf32, #tpu.memory_space<vmem>>, %arg5: memref<1x128xf32, #tpu.memory_space<vmem>>, %arg6: memref<128x128xf32, #tpu.memory_space<vmem>>, %arg7: memref<1x128xf32, #tpu.memory_space<vmem>>, %arg8: memref<8x128xf32, #tpu.memory_space<vmem>>) attributes {dimension_semantics = [], scalar_prefetch = 0 : i64, scratch_operands = 0 : i64, tpu.core_type = #tpu.core_type<tc>} {
    %c0 = arith.constant 0 : index
    %c0_0 = arith.constant 0 : index
    %0 = vector.load %arg2[%c0, %c0_0] : memref<32x128xf32, #tpu.memory_space<vmem>>, vector<32x128xf32>
    %c0_1 = arith.constant 0 : index
    %c0_2 = arith.constant 0 : index
    %1 = vector.load %arg0[%c0_1, %c0_2] : memref<64x16xf32, #tpu.memory_space<vmem>>, vector<64x16xf32>
    %c0_3 = arith.constant 0 : index
    %c0_4 = arith.constant 0 : index
    %2 = vector.load %arg1[%c0_3, %c0_4] : memref<16x128xf32, #tpu.memory_space<vmem>>, vector<16x128xf32>
    %cst = arith.constant dense<0.000000e+00> : vector<64x128xf32>
    %3 = tpu.matmul %1, %2, %cst {dimension_numbers = #tpu.dot_dimension_numbers<[1], [0], [0], [1], [0, 0, 1, 1], [], []>} : vector<64x16xf32>, vector<16x128xf32>, vector<64x128xf32> -> vector<64x128xf32>
    %c0_5 = arith.constant 0 : index
    %c0_6 = arith.constant 0 : index
    %4 = vector.load %arg3[%c0_5, %c0_6] : memref<1x128xf32, #tpu.memory_space<vmem>>, vector<1x128xf32>
    %5 = vector.broadcast %4 : vector<1x128xf32> to vector<64x128xf32>
    %6 = arith.addf %3, %5 : vector<64x128xf32>
    %cst_7 = arith.constant 0.000000e+00 : f32
    %7 = vector.broadcast %cst_7 : f32 to vector<8x32xf32>
    %cst_8 = arith.constant 0.000000e+00 : f32
    %8 = vector.broadcast %cst_8 : f32 to vector<8x32xf32>
    %9 = vector.extract_strided_slice %6 {offsets = [0, 0], sizes = [8, 128], strides = [1, 1]} : vector<64x128xf32> to vector<8x128xf32>
    %cst_9 = arith.constant dense<0.000000e+00> : vector<8x128xf32>
    %10 = tpu.matmul %7, %0, %cst_9 {dimension_numbers = #tpu.dot_dimension_numbers<[1], [0], [0], [1], [0, 0, 1, 1], [], []>} : vector<8x32xf32>, vector<32x128xf32>, vector<8x128xf32> -> vector<8x128xf32>
    %11 = arith.addf %9, %10 : vector<8x128xf32>
    %12 = arith.negf %11 : vector<8x128xf32>
    %13 = math.exp %12 : vector<8x128xf32>
    %cst_10 = arith.constant 1.000000e+00 : f32
    %14 = vector.broadcast %cst_10 : f32 to vector<8x128xf32>
    %15 = arith.addf %14, %13 : vector<8x128xf32>
    %16 = arith.divf %14, %15 : vector<8x128xf32>
    %17 = math.tanh %11 : vector<8x128xf32>
    %18 = vector.extract_strided_slice %16 {offsets = [0, 0], sizes = [8, 32], strides = [1, 1]} : vector<8x128xf32> to vector<8x32xf32>
    %19 = vector.extract_strided_slice %16 {offsets = [0, 32], sizes = [8, 32], strides = [1, 1]} : vector<8x128xf32> to vector<8x32xf32>
    %20 = vector.extract_strided_slice %16 {offsets = [0, 96], sizes = [8, 32], strides = [1, 1]} : vector<8x128xf32> to vector<8x32xf32>
    %21 = vector.extract_strided_slice %17 {offsets = [0, 64], sizes = [8, 32], strides = [1, 1]} : vector<8x128xf32> to vector<8x32xf32>
    %22 = arith.mulf %19, %8 : vector<8x32xf32>
    %23 = arith.mulf %18, %21 : vector<8x32xf32>
    %24 = arith.addf %22, %23 : vector<8x32xf32>
    %25 = math.tanh %24 : vector<8x32xf32>
    %26 = arith.mulf %20, %25 : vector<8x32xf32>
    %27 = vector.extract_strided_slice %6 {offsets = [8, 0], sizes = [8, 128], strides = [1, 1]} : vector<64x128xf32> to vector<8x128xf32>
    %cst_11 = arith.constant dense<0.000000e+00> : vector<8x128xf32>
    %28 = tpu.matmul %26, %0, %cst_11 {dimension_numbers = #tpu.dot_dimension_numbers<[1], [0], [0], [1], [0, 0, 1, 1], [], []>} : vector<8x32xf32>, vector<32x128xf32>, vector<8x128xf32> -> vector<8x128xf32>
    %29 = arith.addf %27, %28 : vector<8x128xf32>
    %30 = arith.negf %29 : vector<8x128xf32>
    %31 = math.exp %30 : vector<8x128xf32>
    %cst_12 = arith.constant 1.000000e+00 : f32
    %32 = vector.broadcast %cst_12 : f32 to vector<8x128xf32>
    %33 = arith.addf %32, %31 : vector<8x128xf32>
    %34 = arith.divf %32, %33 : vector<8x128xf32>
    %35 = math.tanh %29 : vector<8x128xf32>
    %36 = vector.extract_strided_slice %34 {offsets = [0, 0], sizes = [8, 32], strides = [1, 1]} : vector<8x128xf32> to vector<8x32xf32>
    %37 = vector.extract_strided_slice %34 {offsets = [0, 32], sizes = [8, 32], strides = [1, 1]} : vector<8x128xf32> to vector<8x32xf32>
    %38 = vector.extract_strided_slice %34 {offsets = [0, 96], sizes = [8, 32], strides = [1, 1]} : vector<8x128xf32> to vector<8x32xf32>
    %39 = vector.extract_strided_slice %35 {offsets = [0, 64], sizes = [8, 32], strides = [1, 1]} : vector<8x128xf32> to vector<8x32xf32>
    %40 = arith.mulf %37, %24 : vector<8x32xf32>
    %41 = arith.mulf %36, %39 : vector<8x32xf32>
    %42 = arith.addf %40, %41 : vector<8x32xf32>
    %43 = math.tanh %42 : vector<8x32xf32>
    %44 = arith.mulf %38, %43 : vector<8x32xf32>
    %45 = vector.extract_strided_slice %6 {offsets = [16, 0], sizes = [8, 128], strides = [1, 1]} : vector<64x128xf32> to vector<8x128xf32>
    %cst_13 = arith.constant dense<0.000000e+00> : vector<8x128xf32>
    %46 = tpu.matmul %44, %0, %cst_13 {dimension_numbers = #tpu.dot_dimension_numbers<[1], [0], [0], [1], [0, 0, 1, 1], [], []>} : vector<8x32xf32>, vector<32x128xf32>, vector<8x128xf32> -> vector<8x128xf32>
    %47 = arith.addf %45, %46 : vector<8x128xf32>
    %48 = arith.negf %47 : vector<8x128xf32>
    %49 = math.exp %48 : vector<8x128xf32>
    %cst_14 = arith.constant 1.000000e+00 : f32
    %50 = vector.broadcast %cst_14 : f32 to vector<8x128xf32>
    %51 = arith.addf %50, %49 : vector<8x128xf32>
    %52 = arith.divf %50, %51 : vector<8x128xf32>
    %53 = math.tanh %47 : vector<8x128xf32>
    %54 = vector.extract_strided_slice %52 {offsets = [0, 0], sizes = [8, 32], strides = [1, 1]} : vector<8x128xf32> to vector<8x32xf32>
    %55 = vector.extract_strided_slice %52 {offsets = [0, 32], sizes = [8, 32], strides = [1, 1]} : vector<8x128xf32> to vector<8x32xf32>
    %56 = vector.extract_strided_slice %52 {offsets = [0, 96], sizes = [8, 32], strides = [1, 1]} : vector<8x128xf32> to vector<8x32xf32>
    %57 = vector.extract_strided_slice %53 {offsets = [0, 64], sizes = [8, 32], strides = [1, 1]} : vector<8x128xf32> to vector<8x32xf32>
    %58 = arith.mulf %55, %42 : vector<8x32xf32>
    %59 = arith.mulf %54, %57 : vector<8x32xf32>
    %60 = arith.addf %58, %59 : vector<8x32xf32>
    %61 = math.tanh %60 : vector<8x32xf32>
    %62 = arith.mulf %56, %61 : vector<8x32xf32>
    %63 = vector.extract_strided_slice %6 {offsets = [24, 0], sizes = [8, 128], strides = [1, 1]} : vector<64x128xf32> to vector<8x128xf32>
    %cst_15 = arith.constant dense<0.000000e+00> : vector<8x128xf32>
    %64 = tpu.matmul %62, %0, %cst_15 {dimension_numbers = #tpu.dot_dimension_numbers<[1], [0], [0], [1], [0, 0, 1, 1], [], []>} : vector<8x32xf32>, vector<32x128xf32>, vector<8x128xf32> -> vector<8x128xf32>
    %65 = arith.addf %63, %64 : vector<8x128xf32>
    %66 = arith.negf %65 : vector<8x128xf32>
    %67 = math.exp %66 : vector<8x128xf32>
    %cst_16 = arith.constant 1.000000e+00 : f32
    %68 = vector.broadcast %cst_16 : f32 to vector<8x128xf32>
    %69 = arith.addf %68, %67 : vector<8x128xf32>
    %70 = arith.divf %68, %69 : vector<8x128xf32>
    %71 = math.tanh %65 : vector<8x128xf32>
    %72 = vector.extract_strided_slice %70 {offsets = [0, 0], sizes = [8, 32], strides = [1, 1]} : vector<8x128xf32> to vector<8x32xf32>
    %73 = vector.extract_strided_slice %70 {offsets = [0, 32], sizes = [8, 32], strides = [1, 1]} : vector<8x128xf32> to vector<8x32xf32>
    %74 = vector.extract_strided_slice %70 {offsets = [0, 96], sizes = [8, 32], strides = [1, 1]} : vector<8x128xf32> to vector<8x32xf32>
    %75 = vector.extract_strided_slice %71 {offsets = [0, 64], sizes = [8, 32], strides = [1, 1]} : vector<8x128xf32> to vector<8x32xf32>
    %76 = arith.mulf %73, %60 : vector<8x32xf32>
    %77 = arith.mulf %72, %75 : vector<8x32xf32>
    %78 = arith.addf %76, %77 : vector<8x32xf32>
    %79 = math.tanh %78 : vector<8x32xf32>
    %80 = arith.mulf %74, %79 : vector<8x32xf32>
    %81 = vector.extract_strided_slice %6 {offsets = [32, 0], sizes = [8, 128], strides = [1, 1]} : vector<64x128xf32> to vector<8x128xf32>
    %cst_17 = arith.constant dense<0.000000e+00> : vector<8x128xf32>
    %82 = tpu.matmul %80, %0, %cst_17 {dimension_numbers = #tpu.dot_dimension_numbers<[1], [0], [0], [1], [0, 0, 1, 1], [], []>} : vector<8x32xf32>, vector<32x128xf32>, vector<8x128xf32> -> vector<8x128xf32>
    %83 = arith.addf %81, %82 : vector<8x128xf32>
    %84 = arith.negf %83 : vector<8x128xf32>
    %85 = math.exp %84 : vector<8x128xf32>
    %cst_18 = arith.constant 1.000000e+00 : f32
    %86 = vector.broadcast %cst_18 : f32 to vector<8x128xf32>
    %87 = arith.addf %86, %85 : vector<8x128xf32>
    %88 = arith.divf %86, %87 : vector<8x128xf32>
    %89 = math.tanh %83 : vector<8x128xf32>
    %90 = vector.extract_strided_slice %88 {offsets = [0, 0], sizes = [8, 32], strides = [1, 1]} : vector<8x128xf32> to vector<8x32xf32>
    %91 = vector.extract_strided_slice %88 {offsets = [0, 32], sizes = [8, 32], strides = [1, 1]} : vector<8x128xf32> to vector<8x32xf32>
    %92 = vector.extract_strided_slice %88 {offsets = [0, 96], sizes = [8, 32], strides = [1, 1]} : vector<8x128xf32> to vector<8x32xf32>
    %93 = vector.extract_strided_slice %89 {offsets = [0, 64], sizes = [8, 32], strides = [1, 1]} : vector<8x128xf32> to vector<8x32xf32>
    %94 = arith.mulf %91, %78 : vector<8x32xf32>
    %95 = arith.mulf %90, %93 : vector<8x32xf32>
    %96 = arith.addf %94, %95 : vector<8x32xf32>
    %97 = math.tanh %96 : vector<8x32xf32>
    %98 = arith.mulf %92, %97 : vector<8x32xf32>
    %99 = vector.extract_strided_slice %6 {offsets = [40, 0], sizes = [8, 128], strides = [1, 1]} : vector<64x128xf32> to vector<8x128xf32>
    %cst_19 = arith.constant dense<0.000000e+00> : vector<8x128xf32>
    %100 = tpu.matmul %98, %0, %cst_19 {dimension_numbers = #tpu.dot_dimension_numbers<[1], [0], [0], [1], [0, 0, 1, 1], [], []>} : vector<8x32xf32>, vector<32x128xf32>, vector<8x128xf32> -> vector<8x128xf32>
    %101 = arith.addf %99, %100 : vector<8x128xf32>
    %102 = arith.negf %101 : vector<8x128xf32>
    %103 = math.exp %102 : vector<8x128xf32>
    %cst_20 = arith.constant 1.000000e+00 : f32
    %104 = vector.broadcast %cst_20 : f32 to vector<8x128xf32>
    %105 = arith.addf %104, %103 : vector<8x128xf32>
    %106 = arith.divf %104, %105 : vector<8x128xf32>
    %107 = math.tanh %101 : vector<8x128xf32>
    %108 = vector.extract_strided_slice %106 {offsets = [0, 0], sizes = [8, 32], strides = [1, 1]} : vector<8x128xf32> to vector<8x32xf32>
    %109 = vector.extract_strided_slice %106 {offsets = [0, 32], sizes = [8, 32], strides = [1, 1]} : vector<8x128xf32> to vector<8x32xf32>
    %110 = vector.extract_strided_slice %106 {offsets = [0, 96], sizes = [8, 32], strides = [1, 1]} : vector<8x128xf32> to vector<8x32xf32>
    %111 = vector.extract_strided_slice %107 {offsets = [0, 64], sizes = [8, 32], strides = [1, 1]} : vector<8x128xf32> to vector<8x32xf32>
    %112 = arith.mulf %109, %96 : vector<8x32xf32>
    %113 = arith.mulf %108, %111 : vector<8x32xf32>
    %114 = arith.addf %112, %113 : vector<8x32xf32>
    %115 = math.tanh %114 : vector<8x32xf32>
    %116 = arith.mulf %110, %115 : vector<8x32xf32>
    %117 = vector.extract_strided_slice %6 {offsets = [48, 0], sizes = [8, 128], strides = [1, 1]} : vector<64x128xf32> to vector<8x128xf32>
    %cst_21 = arith.constant dense<0.000000e+00> : vector<8x128xf32>
    %118 = tpu.matmul %116, %0, %cst_21 {dimension_numbers = #tpu.dot_dimension_numbers<[1], [0], [0], [1], [0, 0, 1, 1], [], []>} : vector<8x32xf32>, vector<32x128xf32>, vector<8x128xf32> -> vector<8x128xf32>
    %119 = arith.addf %117, %118 : vector<8x128xf32>
    %120 = arith.negf %119 : vector<8x128xf32>
    %121 = math.exp %120 : vector<8x128xf32>
    %cst_22 = arith.constant 1.000000e+00 : f32
    %122 = vector.broadcast %cst_22 : f32 to vector<8x128xf32>
    %123 = arith.addf %122, %121 : vector<8x128xf32>
    %124 = arith.divf %122, %123 : vector<8x128xf32>
    %125 = math.tanh %119 : vector<8x128xf32>
    %126 = vector.extract_strided_slice %124 {offsets = [0, 0], sizes = [8, 32], strides = [1, 1]} : vector<8x128xf32> to vector<8x32xf32>
    %127 = vector.extract_strided_slice %124 {offsets = [0, 32], sizes = [8, 32], strides = [1, 1]} : vector<8x128xf32> to vector<8x32xf32>
    %128 = vector.extract_strided_slice %124 {offsets = [0, 96], sizes = [8, 32], strides = [1, 1]} : vector<8x128xf32> to vector<8x32xf32>
    %129 = vector.extract_strided_slice %125 {offsets = [0, 64], sizes = [8, 32], strides = [1, 1]} : vector<8x128xf32> to vector<8x32xf32>
    %130 = arith.mulf %127, %114 : vector<8x32xf32>
    %131 = arith.mulf %126, %129 : vector<8x32xf32>
    %132 = arith.addf %130, %131 : vector<8x32xf32>
    %133 = math.tanh %132 : vector<8x32xf32>
    %134 = arith.mulf %128, %133 : vector<8x32xf32>
    %135 = vector.extract_strided_slice %6 {offsets = [56, 0], sizes = [8, 128], strides = [1, 1]} : vector<64x128xf32> to vector<8x128xf32>
    %cst_23 = arith.constant dense<0.000000e+00> : vector<8x128xf32>
    %136 = tpu.matmul %134, %0, %cst_23 {dimension_numbers = #tpu.dot_dimension_numbers<[1], [0], [0], [1], [0, 0, 1, 1], [], []>} : vector<8x32xf32>, vector<32x128xf32>, vector<8x128xf32> -> vector<8x128xf32>
    %137 = arith.addf %135, %136 : vector<8x128xf32>
    %138 = arith.negf %137 : vector<8x128xf32>
    %139 = math.exp %138 : vector<8x128xf32>
    %cst_24 = arith.constant 1.000000e+00 : f32
    %140 = vector.broadcast %cst_24 : f32 to vector<8x128xf32>
    %141 = arith.addf %140, %139 : vector<8x128xf32>
    %142 = arith.divf %140, %141 : vector<8x128xf32>
    %143 = math.tanh %137 : vector<8x128xf32>
    %144 = vector.extract_strided_slice %142 {offsets = [0, 0], sizes = [8, 32], strides = [1, 1]} : vector<8x128xf32> to vector<8x32xf32>
    %145 = vector.extract_strided_slice %142 {offsets = [0, 32], sizes = [8, 32], strides = [1, 1]} : vector<8x128xf32> to vector<8x32xf32>
    %146 = vector.extract_strided_slice %142 {offsets = [0, 96], sizes = [8, 32], strides = [1, 1]} : vector<8x128xf32> to vector<8x32xf32>
    %147 = vector.extract_strided_slice %143 {offsets = [0, 64], sizes = [8, 32], strides = [1, 1]} : vector<8x128xf32> to vector<8x32xf32>
    %148 = arith.mulf %145, %132 : vector<8x32xf32>
    %149 = arith.mulf %144, %147 : vector<8x32xf32>
    %150 = arith.addf %148, %149 : vector<8x32xf32>
    %151 = math.tanh %150 : vector<8x32xf32>
    %152 = arith.mulf %146, %151 : vector<8x32xf32>
    %c0_25 = arith.constant 0 : index
    %c0_26 = arith.constant 0 : index
    %153 = vector.load %arg4[%c0_25, %c0_26] : memref<32x128xf32, #tpu.memory_space<vmem>>, vector<32x128xf32>
    %cst_27 = arith.constant dense<0.000000e+00> : vector<8x128xf32>
    %154 = tpu.matmul %152, %153, %cst_27 {dimension_numbers = #tpu.dot_dimension_numbers<[1], [0], [0], [1], [0, 0, 1, 1], [], []>} : vector<8x32xf32>, vector<32x128xf32>, vector<8x128xf32> -> vector<8x128xf32>
    %c0_28 = arith.constant 0 : index
    %c0_29 = arith.constant 0 : index
    %155 = vector.load %arg5[%c0_28, %c0_29] : memref<1x128xf32, #tpu.memory_space<vmem>>, vector<1x128xf32>
    %156 = vector.broadcast %155 : vector<1x128xf32> to vector<8x128xf32>
    %157 = arith.addf %154, %156 : vector<8x128xf32>
    %c0_30 = arith.constant 0 : index
    %c0_31 = arith.constant 0 : index
    %158 = vector.load %arg6[%c0_30, %c0_31] : memref<128x128xf32, #tpu.memory_space<vmem>>, vector<128x128xf32>
    %cst_32 = arith.constant dense<0.000000e+00> : vector<8x128xf32>
    %159 = tpu.matmul %157, %158, %cst_32 {dimension_numbers = #tpu.dot_dimension_numbers<[1], [0], [0], [1], [0, 0, 1, 1], [], []>} : vector<8x128xf32>, vector<128x128xf32>, vector<8x128xf32> -> vector<8x128xf32>
    %c0_33 = arith.constant 0 : index
    %c0_34 = arith.constant 0 : index
    %160 = vector.load %arg7[%c0_33, %c0_34] : memref<1x128xf32, #tpu.memory_space<vmem>>, vector<1x128xf32>
    %161 = vector.broadcast %160 : vector<1x128xf32> to vector<8x128xf32>
    %162 = arith.addf %159, %161 : vector<8x128xf32>
    %c0_35 = arith.constant 0 : index
    %c0_36 = arith.constant 0 : index
    %163 = vector.load %arg8[%c0_35, %c0_36] : memref<8x128xf32, #tpu.memory_space<vmem>>, vector<8x128xf32>
    tpu.vector_store %arg8[%c0_35, %c0_36], %162 {strides = array<i32>} : memref<8x128xf32, #tpu.memory_space<vmem>>, vector<8x128xf32>,
    return
  }
}

</mosaic_0001>

<bundles_post_ra>
// kernel: tpu_custom_call.1
= control target key start
LH: loop header
LB: loop body
LE: loop exit
PB: predicated region body
PF: predicated region fallthrough
CT: control target
= control target key end

     0   :  { %13 = vsyncpa [#allocation3], 0  ;;  %s1915_s0 = inlined_call_operand.vmem [shape: f32[64,16], index: 0, kind: input, shape index: {}]   ;;  %s1916_s1 = inlined_call_operand.vmem [shape: f32[16,128], index: 1, kind: input, shape index: {}]   ;;  %s1917_s2 = inlined_call_operand.vmem [shape: f32[32,128], index: 2, kind: input, shape index: {}]   ;;  %s1918_s3 = inlined_call_operand.vmem [shape: f32[1,128], index: 3, kind: input, shape index: {}]   ;;  %s1919_s4 = inlined_call_operand.vmem [shape: f32[32,128], index: 4, kind: input, shape index: {}]   ;;  %s1920_s5 = inlined_call_operand.vmem [shape: f32[1,128], index: 5, kind: input, shape index: {}]   ;;  %s1921_s6 = inlined_call_operand.hbm [shape: f32[128,128], index: 6, kind: input, shape index: {}]   ;;  %s1922_s7 = inlined_call_operand.vmem [shape: f32[1,128], index: 7, kind: input, shape index: {}]   ;;  %s1923_s8 = inlined_call_operand.hbm [shape: f32[8,128], index: 8, kind: output, shape index: {}]  }
   0x1   :  { %14 = vsyncpa [#allocation4], 0  ;;  %s1641_s27 = smov [#allocation2]   ;;  %s1593_s9 = scalar_lea.hbm %s1921_s6, 2048 }
   0x2   :  { %s32_s28 = sshll.u32 %s1641_s27, 4  ;;  %p1594_p0 = scmp.ne.s32.totalorder %s1921_s6, %s1593_s9  ;;  %s33_s28 = int_to_ptr.vmem [resolvable:$true] %s32_s28 }
   0x3   :  { %p1597_p1 = scmp.lt.u32.totalorder %s1593_s9, %s1921_s6 }
   0x5   :  { %p1599_p2 = pnand %p1597_p1, %p1594_p0 }
   0x7   :  { %1602 = shalt.err (!%p1599_p2)
}
   0x8   :  { %s1603_s14 = scalar_lea.vmem %s33_s28, 2048  ;;  %p1608_p4 = scmp.lt.s32.totalorder %s33_s28, %s33_s28 }
   0x9   :  { %p1604_p3 = scmp.ne.s32.totalorder %s33_s28, %s1603_s14  ;;  %p1609_p5 = scmp.lt.s32.totalorder %s1603_s14, %s1603_s14 }
   0xb   :  { %p1610_p6 = por %p1609_p5, %p1608_p4 }
   0xd   :  { %p1611_p7 = pnand %p1610_p6, %p1604_p3 }
   0xf   :  { %1614 = shalt.err (!%p1611_p7)
}
  0x10   :  { %s1642_s15 = smov 128   ;;  %s1643_s16 = smov 8  }
  0x11   :  { %38 = dma.hbm_to_vmem [thread:$0]  %s1921_s6, 2048, %s33_s28, [#allocation3], %s1642_s15, %s1642_s15, %s1643_s16  }
  0x12   :  { %1637 = dma.done.wait [#allocation3], 2048  }
  0x13   :  { %1638 = vsyncadd [#allocation3], 4294965248  ;;  %v1644_v0 = vmov 0.0|0.0   ;;  %vm1645_vm0 = vmmov 0   ;;  %v1646_v1 = vmov 0.0   ;;  %vm65_vm1 = vcmask 130048  }
  0x14   :  { %1460 = vmatprep.subr.bf16.mxu1 %v1644_v0  ;;  %1345 = vmatprep.mubr.msk.f32.mxu1 %vm1645_vm0, %v1646_v1  ;;  %v56_v2 = vld [vmem:[%s1916_s1] sm:$0xff]  ;;  %v57_v3 = vld [vmem:[%s1916_s1 + $0x8] sm:$0xff]  ;;  %v46_v10 = vld [vmem:[%s1917_s2 + $0x10] sm:$0xff]  ;;  %s1648_s6 = smov 32   ;;  %vm195_vm2 = vcmask 261120   ;;  %s1649_s11 = smov [#allocation5]  }
  0x15   :  { %v48_v4 = vld [vmem:[%s1915_s0] sm:$0xff]  ;;  %v1438_v5 = vpack.c.bf16 %v57_v3, %v56_v2  ;;  %v45_v7 = vld [vmem:[%s1917_s2 + $0x8] sm:$0xff]  ;;  %v47_v11 = vld [vmem:[%s1917_s2 + $0x18] sm:$0xff]  ;;  %s1180_s12 = sshll.u32 %s1649_s11, 4  ;;  %s1181_s12 = int_to_ptr.vmem [resolvable:$true] %s1180_s12 }
  0x16   :  { %1292 = vmatprep.mubr.msk.f32.mxu0 %vm65_vm1, %v48_v4  ;;  %v44_v6 = vld [vmem:[%s1917_s2] sm:$0xff]  ;;  %v49_v9 = vld [vmem:[%s1915_s0 + $0x8] sm:$0xff]  ;;  %v50_v12 = vld [vmem:[%s1915_s0 + $0x10] sm:$0xff]  ;;  %v1744_v13 = vpack.c.bf16 %v47_v11, %v46_v10  ;;  %s1615_s13 = scalar_lea.vmem %s1181_s12, 128  ;;  %p1620_p9 = scmp.lt.s32.totalorder %s1181_s12, %s1181_s12 }
  0x17   :  { %v1726_v8 = vpack.c.bf16 %v45_v7, %v44_v6  ;;  %1439 = vmatprep.subr.bf16.mxu0 %v1438_v5  ;;  %v51_v14 = vld [vmem:[%s1915_s0 + $0x18] sm:$0xff]  ;;  %v52_v15 = vld [vmem:[%s1915_s0 + $0x20] sm:$0xff]  ;;  %v53_v16 = vld [vmem:[%s1915_s0 + $0x28] sm:$0xff]  ;;  %p1616_p8 = scmp.ne.s32.totalorder %s1181_s12, %s1615_s13  ;;  %p1621_p10 = scmp.lt.s32.totalorder %s1615_s13, %s1615_s13 }
  0x18   :  { %1441 = vmatpush3.bf16.msra.mxu0 %v1438_v5  ;;  %v54_v17 = vld [vmem:[%s1915_s0 + $0x30] sm:$0xff]  ;;  %v55_v18 = vld [vmem:[%s1915_s0 + $0x38] sm:$0xff]  ;;  %v1189_v19 = vld [vmem:[%s1918_s3] ss:$0 sm:$0xff]  ;;  %s1647_s3 = smov 64  }
  0x19   :  { %1462 = vmatpush3.bf16.msra.mxu1 %v1726_v8  ;;  %1442 = vmatprep.subr.bf16.mxu0 %v1644_v0  ;;  %p1622_p11 = por %p1621_p10, %p1620_p9 }
  0x1a   :  { %1463 = vmatprep.subr.bf16.mxu1 %v1644_v0 }
  0x1b   :  { %1293 = vmatmul.mubr.msk.f32.vlgmr.msra.gmra.mrb[0].mxu0 %vm65_vm1, %v49_v9  ;;  %p1623_p12 = pnand %p1622_p11, %p1616_p8 }
  0x1c   :  { %1444 = vmatpush3.bf16.msra.mxu0 %v1726_v8  ;;  %1295 = vmatprep.mubr.msk.f32.mxu0 %vm65_vm1, %v50_v12 }
  0x1d   :  { %1445 = vmatprep.subr.bf16.mxu0 %v1644_v0  ;;  %1465 = vmatpush3.bf16.msra.mxu1 %v1744_v13 }
  0x1e   :  { %1472 = vmatprep.subr.bf16.mxu1 %v1644_v0 }
  0x1f   :  { %1296 = vmatmul.mubr.msk.f32.gmra.mrb[2].mxu0 %vm65_vm1, %v51_v14 }
  0x20   :  { %1298 = vmatprep.mubr.msk.f32.mxu0 %vm65_vm1, %v52_v15  ;;  %1447 = vmatpush3.bf16.msra.mxu0 %v1744_v13 }
  0x21   :  { %1448 = vmatprep.subr.bf16.mxu0 %v1644_v0 }
  0x23   :  { %1299 = vmatmul.mubr.msk.f32.gmra.mrb[4].mxu0 %vm65_vm1, %v53_v16 }
  0x24   :  { %1301 = vmatprep.mubr.msk.f32.mxu0 %vm65_vm1, %v54_v17 }
  0x27   :  { %1302 = vmatmul.mubr.msk.f32.gmra.mrb[6].mxu0 %vm65_vm1, %v55_v18 }
  0x28   :  { %1312 = vmatprep.mubr.msk.f32.mxu0 %vm1645_vm0, %v1646_v1 }
  0x2b   :  { %1313 = vmatmul.mubr.f32.vlgmr.msra.gmra.mrb[8].mxu0 %v1646_v1 }
  0x2c   :  { %1450 = vmatpush3.bf16.msra.mxu0 %v1726_v8  ;;  %1323 = vmatprep.mubr.msk.f32.mxu0 %vm1645_vm0, %v1646_v1 }
  0x2d   :  { %1451 = vmatprep.subr.bf16.mxu0 %v1644_v0 }
  0x30   :  { %1453 = vmatpush3.bf16.msra.mxu0 %v1744_v13 }
  0x31   :  { %1454 = vmatprep.subr.bf16.mxu0 %v1644_v0 }
  0xee   :  { %v1294_v20 = vpop.f32.mrb[0].mxu0 }
  0xef   :  { %v162_v21 = vadd.f32 %v1294_v20, %v1189_v19  ;;  %v156_v22 = vpop.f32.mrb[1].mxu0 }
  0xf0   :  { %v157_v35 = vadd.f32 %v1189_v19, %v156_v22 }
  0xf2   :  { %v1297_v23 = vpop.f32.mrb[2].mxu0 }
  0xf3   :  { %v1785_v24 = vadd.f32 %v1297_v23, %v1189_v19  ;;  %v166_v25 = vpop.f32.mrb[3].mxu0 }
  0xf4   :  { %v1787_v26 = vadd.f32 %v1189_v19, %v166_v25 }
  0xf6   :  { %v1300_v27 = vpop.f32.mrb[4].mxu0 }
  0xf7   :  { %v1789_v28 = vadd.f32 %v1300_v27, %v1189_v19  ;;  %v176_v29 = vpop.f32.mrb[5].mxu0 }
  0xf8   :  { %v1791_v30 = vadd.f32 %v1189_v19, %v176_v29 }
  0xfa   :  { %v1303_v31 = vpop.f32.mrb[6].mxu0 }
  0xfb   :  { %v1793_v32 = vadd.f32 %v1303_v31, %v1189_v19  ;;  %v186_v33 = vpop.f32.mrb[7].mxu0 }
  0xfc   :  { %v1795_v34 = vadd.f32 %v1189_v19, %v186_v33 }
  0xfe   :  { %v265_v36 = vpop.f32.mrb[8].mxu0 }
  0xff   :  { %v269_v37 = vadd.f32 %v265_v36, %v157_v35  ;;  %v1314_v38 = vpop.f32.mrb[9].mxu0 }
 0x101   :  { %1529 = vtanh.f32 %v269_v37  ;;  %v1198_v40 = vmul.f32 -1.442695, %v269_v37 }
 0x103   :  { %1531 = vpow2.f32 %v1198_v40 }
 0x10b   :  { %v1530_v39 = vpop.eup %1529 }
 0x10c   :  { %279 = vrot.lane.b32.xlu0 %v1530_v39, %s1647_s3 }
 0x10d   :  { %v1532_v41 = vpop.eup %1531 }
 0x10e   :  { %v273_v42 = vadd.f32 1.0, %v1532_v41 }
 0x110   :  { %1533 = vrcp.f32 %v273_v42 }
 0x11a   :  { %v1534_v43 = vpop.eup %1533 }
 0x11b   :  { %v277_v46 = vmul.f32 0.0, %v1534_v43 }
 0x17e   :  { %v280_v44 = vpop.permute.xlu0 %279 }
 0x17f   :  { %v282_v45 = vmul.f32 %v1534_v43, %v280_v44 }
 0x181   :  { %284 = vrot.lane.b32.xlu0 %v282_v45, %s1648_s6 }
 0x1f3   :  { %v285_v47 = vpop.permute.xlu0 %284 }
 0x1f4   :  { %v287_v48 = vadd.f32 %v285_v47, %v277_v46 }
 0x1f6   :  { %1535 = vtanh.f32 %v287_v48 }
 0x200   :  { %v1536_v49 = vpop.eup %1535 }
 0x201   :  { %290 = vrot.lane.b32.xlu1 %v1536_v49, %s1647_s3 }
 0x273   :  { %v291_v50 = vpop.permute.xlu1 %290 }
 0x274   :  { %v293_v51 = vmul.f32 %v1534_v43, %v291_v50 }
 0x276   :  { %295 = vrot.lane.b32.xlu1 %v293_v51, %s1648_s6 }
 0x2e8   :  { %v296_v52 = vpop.permute.xlu1 %295 }
 0x2e9   :  { %1324 = vmatmul.mubr.msk.f32.vlgmr.msra.gmra.mrb[10].mxu0 %vm195_vm2, %v296_v52 }
 0x2ea   :  { %1456 = vmatpush3.bf16.msra.mxu0 %v1726_v8  ;;  %1334 = vmatprep.mubr.msk.f32.mxu0 %vm1645_vm0, %v1646_v1 }
 0x2eb   :  { %1457 = vmatprep.subr.bf16.mxu0 %v1644_v0 }
 0x2ee   :  { %1459 = vmatpush3.bf16.msra.mxu0 %v1744_v13 }
 0x2ef   :  { %1466 = vmatprep.subr.bf16.mxu0 %v1644_v0 }
 0x3bc   :  { %v365_v53 = vpop.f32.mrb[10].mxu0 }
 0x3bd   :  { %v369_v54 = vadd.f32 %v365_v53, %v162_v21  ;;  %v1325_v55 = vpop.f32.mrb[11].mxu0 }
 0x3bf   :  { %1537 = vtanh.f32 %v369_v54  ;;  %v1200_v57 = vmul.f32 -1.442695, %v369_v54 }
 0x3c1   :  { %1539 = vpow2.f32 %v1200_v57 }
 0x3c9   :  { %v1538_v56 = vpop.eup %1537 }
 0x3ca   :  { %379 = vrot.lane.b32.xlu0 %v1538_v56, %s1647_s3 }
 0x3cb   :  { %v1540_v58 = vpop.eup %1539 }
 0x3cc   :  { %v373_v59 = vadd.f32 1.0, %v1540_v58 }
 0x3ce   :  { %1541 = vrcp.f32 %v373_v59 }
 0x3d8   :  { %v1542_v60 = vpop.eup %1541 }
 0x3d9   :  { %v377_v63 = vmul.f32 %v1542_v60, %v287_v48 }
 0x43c   :  { %v380_v61 = vpop.permute.xlu0 %379 }
 0x43d   :  { %v382_v62 = vmul.f32 %v1542_v60, %v380_v61 }
 0x43f   :  { %384 = vrot.lane.b32.xlu1 %v382_v62, %s1648_s6 }
 0x4b1   :  { %v385_v2 = vpop.permute.xlu1 %384 }
 0x4b2   :  { %v387_v3 = vadd.f32 %v385_v2, %v377_v63 }
 0x4b4   :  { %1543 = vtanh.f32 %v387_v3 }
 0x4be   :  { %v1544_v4 = vpop.eup %1543 }
 0x4bf   :  { %390 = vrot.lane.b32.xlu0 %v1544_v4, %s1647_s3 }
 0x531   :  { %v391_v5 = vpop.permute.xlu0 %390 }
 0x532   :  { %v393_v6 = vmul.f32 %v1542_v60, %v391_v5 }
 0x534   :  { %395 = vrot.lane.b32.xlu1 %v393_v6, %s1648_s6 }
 0x5a6   :  { %v396_v7 = vpop.permute.xlu1 %395 }
 0x5a7   :  { %1335 = vmatmul.mubr.msk.f32.vlgmr.msra.gmra.mrb[12].mxu0 %vm195_vm2, %v396_v7 }
 0x5a8   :  { %1468 = vmatpush3.bf16.msra.mxu0 %v1726_v8  ;;  %1356 = vmatprep.mubr.msk.f32.mxu0 %vm1645_vm0, %v1646_v1 }
 0x5a9   :  { %1469 = vmatprep.subr.bf16.mxu0 %v1644_v0 }
 0x5ac   :  { %1471 = vmatpush3.bf16.msra.mxu0 %v1744_v13 }
 0x5ad   :  { %1478 = vmatprep.subr.bf16.mxu0 %v1644_v0 }
 0x67a   :  { %v465_v9 = vpop.f32.mrb[12].mxu0 }
 0x67b   :  { %v469_v10 = vadd.f32 %v465_v9, %v1787_v26  ;;  %v1336_v11 = vpop.f32.mrb[13].mxu0 }
 0x67d   :  { %1545 = vtanh.f32 %v469_v10  ;;  %v1202_v14 = vmul.f32 -1.442695, %v469_v10 }
 0x67f   :  { %1547 = vpow2.f32 %v1202_v14 }
 0x687   :  { %v1546_v12 = vpop.eup %1545 }
 0x688   :  { %479 = vrot.lane.b32.xlu0 %v1546_v12, %s1647_s3 }
 0x689   :  { %v1548_v15 = vpop.eup %1547 }
 0x68a   :  { %v473_v16 = vadd.f32 1.0, %v1548_v15 }
 0x68c   :  { %1549 = vrcp.f32 %v473_v16 }
 0x696   :  { %v1550_v17 = vpop.eup %1549 }
 0x697   :  { %v477_v20 = vmul.f32 %v1550_v17, %v387_v3 }
 0x6fa   :  { %v480_v18 = vpop.permute.xlu0 %479 }
 0x6fb   :  { %v482_v19 = vmul.f32 %v1550_v17, %v480_v18 }
 0x6fd   :  { %484 = vrot.lane.b32.xlu1 %v482_v19, %s1648_s6 }
 0x76f   :  { %v485_v21 = vpop.permute.xlu1 %484 }
 0x770   :  { %v487_v22 = vadd.f32 %v485_v21, %v477_v20 }
 0x772   :  { %1551 = vtanh.f32 %v487_v22 }
 0x77c   :  { %v1552_v23 = vpop.eup %1551 }
 0x77d   :  { %490 = vrot.lane.b32.xlu0 %v1552_v23, %s1647_s3 }
 0x7ef   :  { %v491_v25 = vpop.permute.xlu0 %490 }
 0x7f0   :  { %v493_v26 = vmul.f32 %v1550_v17, %v491_v25 }
 0x7f2   :  { %495 = vrot.lane.b32.xlu1 %v493_v26, %s1648_s6 }
 0x864   :  { %v496_v27 = vpop.permute.xlu1 %495 }
 0x865   :  { %1346 = vmatmul.mubr.msk.f32.vlgmr.msra.gmra.mrb[0].mxu1 %vm195_vm2, %v496_v27 }
 0x866   :  { %1474 = vmatpush3.bf16.msra.mxu1 %v1726_v8  ;;  %1367 = vmatprep.mubr.msk.f32.mxu1 %vm1645_vm0, %v1646_v1 }
 0x867   :  { %1475 = vmatprep.subr.bf16.mxu1 %v1644_v0 }
 0x86a   :  { %1477 = vmatpush3.bf16.msra.mxu1 %v1744_v13 }
 0x86b   :  { %1484 = vmatprep.subr.bf16.mxu1 %v1644_v0 }
 0x938   :  { %v565_v29 = vpop.f32.mrb[0].mxu1 }
 0x939   :  { %v569_v31 = vadd.f32 %v565_v29, %v1785_v24  ;;  %v1347_v33 = vpop.f32.mrb[1].mxu1 }
 0x93b   :  { %1553 = vtanh.f32 %v569_v31  ;;  %v1204_v36 = vmul.f32 -1.442695, %v569_v31 }
 0x93d   :  { %1555 = vpow2.f32 %v1204_v36 }
 0x945   :  { %v1554_v35 = vpop.eup %1553 }
 0x946   :  { %579 = vrot.lane.b32.xlu0 %v1554_v35, %s1647_s3 }
 0x947   :  { %v1556_v37 = vpop.eup %1555 }
 0x948   :  { %v573_v38 = vadd.f32 1.0, %v1556_v37 }
 0x94a   :  { %1557 = vrcp.f32 %v573_v38 }
 0x954   :  { %v1558_v39 = vpop.eup %1557 }
 0x955   :  { %v577_v42 = vmul.f32 %v1558_v39, %v487_v22 }
 0x9b8   :  { %v580_v40 = vpop.permute.xlu0 %579 }
 0x9b9   :  { %v582_v41 = vmul.f32 %v1558_v39, %v580_v40 }
 0x9bb   :  { %584 = vrot.lane.b32.xlu1 %v582_v41, %s1648_s6 }
 0xa2d   :  { %v585_v43 = vpop.permute.xlu1 %584 }
 0xa2e   :  { %v587_v44 = vadd.f32 %v585_v43, %v577_v42 }
 0xa30   :  { %1559 = vtanh.f32 %v587_v44 }
 0xa3a   :  { %v1560_v24 = vpop.eup %1559 }
 0xa3b   :  { %590 = vrot.lane.b32.xlu0 %v1560_v24, %s1647_s3 }
 0xaad   :  { %v591_v45 = vpop.permute.xlu0 %590 }
 0xaae   :  { %v593_v46 = vmul.f32 %v1558_v39, %v591_v45 }
 0xab0   :  { %595 = vrot.lane.b32.xlu1 %v593_v46, %s1648_s6 }
 0xb22   :  { %v596_v47 = vpop.permute.xlu1 %595 }
 0xb23   :  { %1357 = vmatmul.mubr.msk.f32.vlgmr.msra.gmra.mrb[14].mxu0 %vm195_vm2, %v596_v47 }
 0xb24   :  { %1480 = vmatpush3.bf16.msra.mxu0 %v1726_v8  ;;  %1378 = vmatprep.mubr.msk.f32.mxu0 %vm1645_vm0, %v1646_v1 }
 0xb25   :  { %1481 = vmatprep.subr.bf16.mxu0 %v1644_v0 }
 0xb28   :  { %1483 = vmatpush3.bf16.msra.mxu0 %v1744_v13 }
 0xb29   :  { %1490 = vmatprep.subr.bf16.mxu0 %v1644_v0 }
 0xbf6   :  { %v665_v48 = vpop.f32.mrb[14].mxu0 }
 0xbf7   :  { %v669_v49 = vadd.f32 %v665_v48, %v1791_v30  ;;  %v1358_v50 = vpop.f32.mrb[15].mxu0 }
 0xbf8   :  { %v995_v50 = vld [vmem:[%s1919_s4 + $0x8] sm:$0xff] }
 0xbf9   :  { %1561 = vtanh.f32 %v669_v49  ;;  %v1206_v52 = vmul.f32 -1.442695, %v669_v49 }
 0xbfb   :  { %1563 = vpow2.f32 %v1206_v52 }
 0xc03   :  { %v1562_v51 = vpop.eup %1561 }
 0xc04   :  { %679 = vrot.lane.b32.xlu0 %v1562_v51, %s1647_s3  ;;  %v996_v51 = vld [vmem:[%s1919_s4 + $0x10] sm:$0xff] }
 0xc05   :  { %v1564_v53 = vpop.eup %1563 }
 0xc06   :  { %v673_v54 = vadd.f32 1.0, %v1564_v53  ;;  %v997_v53 = vld [vmem:[%s1919_s4 + $0x18] sm:$0xff] }
 0xc08   :  { %1565 = vrcp.f32 %v673_v54  ;;  %v1494_v54 = vpack.c.bf16 %v997_v53, %v996_v51 }
 0xc12   :  { %v1566_v55 = vpop.eup %1565 }
 0xc13   :  { %v677_v58 = vmul.f32 %v1566_v55, %v587_v44 }
 0xc76   :  { %v680_v56 = vpop.permute.xlu0 %679 }
 0xc77   :  { %v682_v57 = vmul.f32 %v1566_v55, %v680_v56  ;;  %v1080_v56 = vld [vmem:[#allocation2] sm:$0xff] }
 0xc79   :  { %684 = vrot.lane.b32.xlu1 %v682_v57, %s1648_s6  ;;  %v1081_v57 = vld [vmem:[#allocation2 + $0x8] sm:$0xff] }
 0xceb   :  { %v685_v59 = vpop.permute.xlu1 %684 }
 0xcec   :  { %v687_v60 = vadd.f32 %v685_v59, %v677_v58  ;;  %v1082_v58 = vld [vmem:[#allocation2 + $0x10] sm:$0xff]  ;;  %v1497_v59 = vpack.c.bf16 %v1081_v57, %v1080_v56 }
 0xcee   :  { %1567 = vtanh.f32 %v687_v60 }
 0xcf8   :  { %v1568_v30 = vpop.eup %1567 }
 0xcf9   :  { %690 = vrot.lane.b32.xlu0 %v1568_v30, %s1647_s3 }
 0xd6b   :  { %v691_v61 = vpop.permute.xlu0 %690 }
 0xd6c   :  { %v693_v62 = vmul.f32 %v1566_v55, %v691_v61  ;;  %v1084_v61 = vld [vmem:[#allocation2 + $0x20] sm:$0xff] }
 0xd6e   :  { %695 = vrot.lane.b32.xlu1 %v693_v62, %s1648_s6  ;;  %v1085_v62 = vld [vmem:[#allocation2 + $0x28] sm:$0xff] }
 0xde0   :  { %v696_v63 = vpop.permute.xlu1 %695 }
 0xde1   :  { %1368 = vmatmul.mubr.msk.f32.vlgmr.msra.gmra.mrb[2].mxu1 %vm195_vm2, %v696_v63  ;;  %v1503_v63 = vpack.c.bf16 %v1085_v62, %v1084_v61 }
 0xde2   :  { %1486 = vmatpush3.bf16.msra.mxu1 %v1726_v8  ;;  %1389 = vmatprep.mubr.msk.f32.mxu1 %vm1645_vm0, %v1646_v1 }
 0xde3   :  { %1487 = vmatprep.subr.bf16.mxu1 %v1644_v0 }
 0xde6   :  { %1489 = vmatpush3.bf16.msra.mxu1 %v1744_v13 }
 0xde7   :  { %1496 = vmatprep.subr.bf16.mxu1 %v1644_v0 }
 0xeb4   :  { %v765_v2 = vpop.f32.mrb[2].mxu1 }
 0xeb5   :  { %v769_v3 = vadd.f32 %v765_v2, %v1789_v28  ;;  %v1369_v4 = vpop.f32.mrb[3].mxu1  ;;  %v1086_v2 = vld [vmem:[#allocation2 + $0x30] sm:$0xff] }
 0xeb7   :  { %1569 = vtanh.f32 %v769_v3  ;;  %v1208_v6 = vmul.f32 -1.442695, %v769_v3  ;;  %v1087_v3 = vld [vmem:[#allocation2 + $0x38] sm:$0xff] }
 0xeb9   :  { %1571 = vpow2.f32 %v1208_v6  ;;  %v1506_v6 = vpack.c.bf16 %v1087_v3, %v1086_v2 }
 0xec1   :  { %v1570_v5 = vpop.eup %1569 }
 0xec2   :  { %779 = vrot.lane.b32.xlu0 %v1570_v5, %s1647_s3 }
 0xec3   :  { %v1572_v8 = vpop.eup %1571 }
 0xec4   :  { %v773_v7 = vadd.f32 1.0, %v1572_v8  ;;  %v1088_v8 = vld [vmem:[#allocation2 + $0x40] sm:$0xff] }
 0xec6   :  { %1573 = vrcp.f32 %v773_v7  ;;  %v1089_v7 = vld [vmem:[#allocation2 + $0x48] sm:$0xff] }
 0xed0   :  { %v1574_v9 = vpop.eup %1573 }
 0xed1   :  { %v777_v13 = vmul.f32 %v1574_v9, %v687_v60  ;;  %v1083_v60 = vld [vmem:[#allocation2 + $0x18] sm:$0xff] }
 0xed2   :  { %v1500_v30 = vpack.c.bf16 %v1083_v60, %v1082_v58 }
 0xf34   :  { %v780_v10 = vpop.permute.xlu0 %779 }
 0xf35   :  { %v782_v11 = vmul.f32 %v1574_v9, %v780_v10  ;;  %v1090_v10 = vld [vmem:[#allocation2 + $0x50] sm:$0xff] }
 0xf37   :  { %784 = vrot.lane.b32.xlu1 %v782_v11, %s1648_s6  ;;  %v1091_v11 = vld [vmem:[#allocation2 + $0x58] sm:$0xff] }
 0xfa9   :  { %v785_v12 = vpop.permute.xlu1 %784 }
 0xfaa   :  { %v787_v14 = vadd.f32 %v785_v12, %v777_v13  ;;  %v1512_v13 = vpack.c.bf16 %v1091_v11, %v1090_v10  ;;  %v1092_v12 = vld [vmem:[#allocation2 + $0x60] sm:$0xff] }
 0xfac   :  { %1575 = vtanh.f32 %v787_v14 }
 0xfb6   :  { %v1576_v28 = vpop.eup %1575 }
 0xfb7   :  { %790 = vrot.lane.b32.xlu0 %v1576_v28, %s1647_s3 }
0x1029   :  { %v791_v15 = vpop.permute.xlu0 %790 }
0x102a   :  { %v793_v16 = vmul.f32 %v1574_v9, %v791_v15  ;;  %v1509_v9 = vpack.c.bf16 %v1089_v7, %v1088_v8 }
0x102c   :  { %795 = vrot.lane.b32.xlu1 %v793_v16, %s1648_s6  ;;  %v1094_v16 = vld [vmem:[#allocation2 + $0x70] sm:$0xff] }
0x109e   :  { %v796_v17 = vpop.permute.xlu1 %795 }
0x109f   :  { %1379 = vmatmul.mubr.msk.f32.vlgmr.msra.gmra.mrb[16].mxu0 %vm195_vm2, %v796_v17  ;;  %v1095_v17 = vld [vmem:[#allocation2 + $0x78] sm:$0xff] }
0x10a0   :  { %1400 = vmatprep.mubr.msk.f32.mxu0 %vm1645_vm0, %v1646_v1 }
0x1172   :  { %v865_v18 = vpop.f32.mrb[16].mxu0 }
0x1173   :  { %v869_v19 = vadd.f32 %v865_v18, %v1795_v34  ;;  %v1380_v20 = vpop.f32.mrb[17].mxu0  ;;  %v1518_v18 = vpack.c.bf16 %v1095_v17, %v1094_v16 }
0x1175   :  { %1577 = vtanh.f32 %v869_v19  ;;  %v1210_v22 = vmul.f32 -1.442695, %v869_v19  ;;  %v1213_v19 = vld [vmem:[%s1920_s5] ss:$0 sm:$0xff] }
0x1177   :  { %1579 = vpow2.f32 %v1210_v22 }
0x117f   :  { %v1578_v21 = vpop.eup %1577 }
0x1180   :  { %879 = vrot.lane.b32.xlu0 %v1578_v21, %s1647_s3 }
0x1181   :  { %v1580_v23 = vpop.eup %1579 }
0x1182   :  { %v873_v25 = vadd.f32 1.0, %v1580_v23  ;;  %v1215_v23 = vld [vmem:[%s1922_s7] ss:$0 sm:$0xff] }
0x1184   :  { %1581 = vrcp.f32 %v873_v25 }
0x118e   :  { %v1582_v26 = vpop.eup %1581 }
0x118f   :  { %v877_v31 = vmul.f32 %v1582_v26, %v787_v14  ;;  %v1093_v14 = vld [vmem:[#allocation2 + $0x68] sm:$0xff] }
0x1190   :  { %v1515_v28 = vpack.c.bf16 %v1093_v14, %v1092_v12 }
0x11f2   :  { %v880_v27 = vpop.permute.xlu0 %879 }
0x11f3   :  { %v882_v29 = vmul.f32 %v1582_v26, %v880_v27 }
0x11f5   :  { %884 = vrot.lane.b32.xlu1 %v882_v29, %s1648_s6 }
0x1267   :  { %v885_v33 = vpop.permute.xlu1 %884 }
0x1268   :  { %v887_v35 = vadd.f32 %v885_v33, %v877_v31 }
0x126a   :  { %1583 = vtanh.f32 %v887_v35 }
0x1274   :  { %v1584_v34 = vpop.eup %1583 }
0x1275   :  { %890 = vrot.lane.b32.xlu0 %v1584_v34, %s1647_s3 }
0x12e7   :  { %v891_v36 = vpop.permute.xlu0 %890 }
0x12e8   :  { %v893_v37 = vmul.f32 %v1582_v26, %v891_v36 }
0x12ea   :  { %895 = vrot.lane.b32.xlu1 %v893_v37, %s1648_s6 }
0x135c   :  { %v896_v38 = vpop.permute.xlu1 %895 }
0x135d   :  { %1390 = vmatmul.mubr.msk.f32.vlgmr.msra.gmra.mrb[4].mxu1 %vm195_vm2, %v896_v38 }
0x135e   :  { %1435 = vmatprep.mubr.msk.f32.mxu1 %vm1645_vm0, %v1646_v1  ;;  %1498 = vmatpush3.bf16.msra.mxu1 %v1497_v59 }
0x135f   :  { %1499 = vmatprep.subr.bf16.mxu1 %v1644_v0 }
0x1362   :  { %1501 = vmatpush3.bf16.msra.mxu1 %v1500_v30 }
0x1363   :  { %1502 = vmatprep.subr.bf16.mxu1 %v1644_v0 }
0x1366   :  { %1504 = vmatpush3.bf16.msra.mxu1 %v1503_v63 }
0x1367   :  { %1505 = vmatprep.subr.bf16.mxu1 %v1644_v0 }
0x136a   :  { %1507 = vmatpush3.bf16.msra.mxu1 %v1506_v6 }
0x136b   :  { %1508 = vmatprep.subr.bf16.mxu1 %v1644_v0 }
0x136e   :  { %1510 = vmatpush3.bf16.msra.mxu1 %v1509_v9 }
0x136f   :  { %1511 = vmatprep.subr.bf16.mxu1 %v1644_v0 }
0x1372   :  { %1513 = vmatpush3.bf16.msra.mxu1 %v1512_v13 }
0x1373   :  { %1514 = vmatprep.subr.bf16.mxu1 %v1644_v0 }
0x1376   :  { %1516 = vmatpush3.bf16.msra.mxu1 %v1515_v28 }
0x1377   :  { %1517 = vmatprep.subr.bf16.mxu1 %v1644_v0 }
0x137a   :  { %1519 = vmatpush3.bf16.msra.mxu1 %v1518_v18 }
0x1430   :  { %v965_v39 = vpop.f32.mrb[4].mxu1 }
0x1431   :  { %v969_v40 = vadd.f32 %v965_v39, %v1793_v32  ;;  %v1391_v41 = vpop.f32.mrb[5].mxu1  ;;  %v994_v32 = vld [vmem:[%s1919_s4] sm:$0xff] }
0x1432   :  { %v1491_v52 = vpack.c.bf16 %v995_v50, %v994_v32 }
0x1433   :  { %1585 = vtanh.f32 %v969_v40  ;;  %v1212_v43 = vmul.f32 -1.442695, %v969_v40 }
0x1434   :  { %1492 = vmatpush3.bf16.msra.mxu0 %v1491_v52 }
0x1435   :  { %1587 = vpow2.f32 %v1212_v43  ;;  %1493 = vmatprep.subr.bf16.mxu0 %v1644_v0 }
0x1438   :  { %1495 = vmatpush3.bf16.msra.mxu0 %v1494_v54 }
0x143d   :  { %v1586_v42 = vpop.eup %1585 }
0x143e   :  { %979 = vrot.lane.b32.xlu0 %v1586_v42, %s1647_s3 }
0x143f   :  { %v1588_v44 = vpop.eup %1587 }
0x1440   :  { %v973_v24 = vadd.f32 1.0, %v1588_v44 }
0x1442   :  { %1589 = vrcp.f32 %v973_v24 }
0x144c   :  { %v1590_v45 = vpop.eup %1589 }
0x144d   :  { %v977_v48 = vmul.f32 %v1590_v45, %v887_v35 }
0x14b0   :  { %v980_v46 = vpop.permute.xlu0 %979 }
0x14b1   :  { %v982_v47 = vmul.f32 %v1590_v45, %v980_v46 }
0x14b3   :  { %984 = vrot.lane.b32.xlu1 %v982_v47, %s1648_s6 }
0x1525   :  { %v985_v1 = vpop.permute.xlu1 %984 }
0x1526   :  { %v987_v49 = vadd.f32 %v985_v1, %v977_v48 }
0x1528   :  { %1591 = vtanh.f32 %v987_v49 }
0x1532   :  { %v1592_v55 = vpop.eup %1591 }
0x1533   :  { %990 = vrot.lane.b32.xlu0 %v1592_v55, %s1647_s3 }
0x15a5   :  { %v991_v4 = vpop.permute.xlu0 %990 }
0x15a6   :  { %v993_v5 = vmul.f32 %v1590_v45, %v991_v4 }
0x15a8   :  { %1006 = vrot.lane.b32.xlu1 %v993_v5, %s1648_s6 }
0x161a   :  { %v1007_v15 = vpop.permute.xlu1 %1006 }
0x161b   :  { %1401 = vmatmul.mubr.msk.f32.vlgmr.msra.gmra.mrb[18].mxu0 %vm195_vm2, %v1007_v15 }
0x16ee   :  { %v1076_v20 = vpop.f32.mrb[18].mxu0 }
0x16ef   :  { %v1077_v21 = vadd.f32 %v1213_v19, %v1076_v20  ;;  %v1402_v22 = vpop.f32.mrb[19].mxu0 }
0x16f1   :  { %1436 = vmatmul.mubr.f32.vlgmr.msra.gmra.mrb[6].mxu1 %v1077_v21 }
0x17c4   :  { %v1169_v0 = vpop.f32.mrb[6].mxu1 }
0x17c5   :  { %v1170_v25 = vadd.f32 %v1215_v23, %v1169_v0  ;;  %v1437_v26 = vpop.f32.mrb[7].mxu1 }
0x17c7   :  { %1173 = vst [vmem:[#allocation5] sm:$0xff] %v1170_v25 }
0x17c8   :  { %1626 = shalt.err (!%p1623_p12)
}
0x17c9   :  { %s1627_s14 = scalar_lea.hbm %s1923_s8, 128 }
0x17ca   :  { %p1628_p13 = scmp.ne.s32.totalorder %s1923_s8, %s1627_s14  ;;  %p1631_p0 = scmp.lt.u32.totalorder %s1627_s14, %s1923_s8 }
0x17cc   :  { %p1633_p1 = pnand %p1631_p0, %p1628_p13 }
0x17ce   :  { %1636 = shalt.err (!%p1633_p1)
}
0x17cf   :  { %1183 = dma.vmem_to_hbm [thread:$0]  %s1181_s12, 128, %s1923_s8, [#allocation4]  }
0x17d0   :  { %1639 = dma.done.wait [#allocation4], 128  }
0x17d1   :  { %1640 = vsyncadd [#allocation4], 4294967168 }
0x17d2   :  { %1187 = vsyncpa [#allocation3], 1 }
0x17d3   :  { %1188 = vsyncpa [#allocation4], 1 }

</bundles_post_ra>
